<compile_context>
chip_gen: v5e
topology: v5e:2x2
jax: 0.10.0
libtpu: 0.0.40
codegen_flags: <defaults>
</compile_context>

<pallas_src>
import functools

import jax
import jax.numpy as jnp
from jax import lax
from jax.experimental import pallas as pl
from jax.experimental.pallas import tpu as pltpu


_VMEM_LIMIT = 48 * 1024 * 1024   # explicit scoped-VMEM budget (headroom on v7x's 64 MiB)


def _pick_tile(total, desired):
    """Largest multiple of 8 that divides `total` and is <= desired, else `total`."""
    if total <= desired:
        return total
    t = (min(desired, total) // 8) * 8
    while t >= 8:
        if total % t == 0:
            return t
        t -= 8
    return total


# -----------------------------------------------------------------------------
# Kernel 1: fused q/k/v projections (computed once, full MXU width).
# -----------------------------------------------------------------------------
def qkv_proj_kernel(q_ref, k_ref, v_ref,
                    wq_ref, bq_ref, wk_ref, bk_ref, wv_ref, bv_ref,
                    qo_ref, ko_ref, vo_ref, *, compute_dtype):
    cd = compute_dtype

    def proj(x_ref, w_ref, b_ref, o_ref):
        x = x_ref[0].astype(cd)                          # cast after the DMA, in-kernel
        y = jnp.dot(x, w_ref[...], preferred_element_type=jnp.float32) + b_ref[...]
        o_ref[0] = y.astype(o_ref.dtype)

    proj(q_ref, wq_ref, bq_ref, qo_ref)                  # scale already folded into wq/bq
    proj(k_ref, wk_ref, bk_ref, ko_ref)
    proj(v_ref, wv_ref, bv_ref, vo_ref)


# -----------------------------------------------------------------------------
# Kernel 2: flash attention (online softmax over kv tiles) + per-head output
#           projection folded into an f32 accumulator over the head axis.
# -----------------------------------------------------------------------------
def flash_attn_kernel(q_ref, k_ref, v_ref, wo_ref, bo_ref,
                      out_ref, m_ref, l_ref, ctx_ref, oacc_ref, *, compute_dtype):
    h = pl.program_id(2)
    kv = pl.program_id(3)
    cd = compute_dtype

    @pl.when(kv == 0)
    def _():
        m_ref[...] = jnp.full_like(m_ref, -jnp.inf)
        l_ref[...] = jnp.zeros_like(l_ref)
        ctx_ref[...] = jnp.zeros_like(ctx_ref)

    qh = q_ref[0, 0]            # (tq, depth)  compute_dtype
    kh = k_ref[0, 0]            # (tk, depth)
    vh = v_ref[0, 0]            # (tk, depth)

    # scores[q, k] = <q_h[q, :], k_h[k, :]> — transposed contraction fed natively
    # to the MXU (no in-kernel transpose). Scale is already folded into wq/bq.
    s = lax.dot_general(qh, kh, dimension_numbers=(((1,), (1,)), ((), ())),
                        preferred_element_type=jnp.float32)          # (tq, tk) f32

    # TODO(synk): optional additive mask (mask * -1e9) not wired; forward() default is mask=None.

    m_prev = m_ref[...]
    m_new = jnp.maximum(m_prev, jnp.max(s, axis=-1, keepdims=True))
    alpha = jnp.exp(m_prev - m_new)
    p = jnp.exp(s - m_new)
    l_ref[...] = alpha * l_ref[...] + jnp.sum(p, axis=-1, keepdims=True)
    ctx_ref[...] = alpha * ctx_ref[...] + jnp.dot(p.astype(cd), vh,
                                                  preferred_element_type=jnp.float32)
    m_ref[...] = m_new

    @pl.when(kv == pl.num_programs(3) - 1)
    def _():
        # Normalize this head's context and fold it through its slice of the
        # dense (output) projection; accumulate across heads in f32.
        ctx = ctx_ref[...] * pl.reciprocal(l_ref[...], approx=True)   # (tq, depth)
        partial = jnp.dot(ctx.astype(cd), wo_ref[0],
                          preferred_element_type=jnp.float32)          # (tq, D)

        @pl.when(h == 0)
        def _():
            oacc_ref[...] = jnp.zeros_like(oacc_ref)

        oacc_ref[...] += partial

        @pl.when(h == pl.num_programs(2) - 1)
        def _():
            out_ref[0] = (oacc_ref[...] + bo_ref[...]).astype(out_ref.dtype)


# -----------------------------------------------------------------------------
# Wrapper
# -----------------------------------------------------------------------------
def multi_head_attention(q, k, v, params, num_heads, *,
                         compute_dtype=jnp.bfloat16,
                         q_block=128, kv_block=256, proj_block=256):
    """Forward pass of the PyTorch MultiHeadAttention module (mask=None).

    params = (wq, bq, wk, bk, wv, bv, wo, bo) in PyTorch nn.Linear layout:
    weights (out_features, in_features), biases (1, out_features).
    """
    B, S, D = q.shape
    assert k.shape == (B, S, D) and v.shape == (B, S, D)
    assert D % num_heads == 0
    depth = D // num_heads
    wq, bq, wk, bk, wv, bv, wo, bo = params

    f32 = jnp.float32
    scale = 1.0 / jnp.sqrt(f32(depth))

    # Pre-arrange parameters once in the wrapper (weights only — tiny vs activations):
    #   * transpose to (in, out) -> no in-kernel transposes,
    #   * fold the 1/sqrt(depth) score scale into wq / bq,
    #   * matmul operands in compute_dtype (bf16 MXU fast path), biases in f32.
    wq_t = (wq.astype(f32).T * scale).astype(compute_dtype)      # (D, D)
    wk_t = wk.astype(f32).T.astype(compute_dtype)
    wv_t = wv.astype(f32).T.astype(compute_dtype)
    bq_r = bq.astype(f32) * scale                                 # (1, D)
    bk_r = bk.astype(f32)
    bv_r = bv.astype(f32)
    wo_r = wo.astype(f32).T.reshape(num_heads, depth, D).astype(compute_dtype)
    bo_r = bo.astype(f32)                                         # (1, D)

    # ----------------- Kernel 1: fused QKV projection -----------------
    ts = _pick_tile(S, proj_block)
    ns = S // ts

    x_spec = pl.BlockSpec((1, ts, D), lambda b, i: (b, i, 0))
    w_spec = pl.BlockSpec((D, D), lambda b, i: (0, 0))
    b_spec = pl.BlockSpec((1, D), lambda b, i: (0, 0))

    proj_out = jax.ShapeDtypeStruct((B, S, D), compute_dtype)
    q_p, k_p, v_p = pl.pallas_call(
        functools.partial(qkv_proj_kernel, compute_dtype=compute_dtype),
        out_shape=(proj_out, proj_out, proj_out),
        grid_spec=pltpu.PrefetchScalarGridSpec(
            num_scalar_prefetch=0,
            grid=(B, ns),
            in_specs=[x_spec, x_spec, x_spec,
                      w_spec, b_spec, w_spec, b_spec, w_spec, b_spec],
            out_specs=(x_spec, x_spec, x_spec),
        ),
        compiler_params=pltpu.CompilerParams(
            dimension_semantics=("parallel", "parallel"),
            vmem_limit_bytes=_VMEM_LIMIT),
    )(q, k, v, wq_t, bq_r, wk_t, bk_r, wv_t, bv_r)

    # Split heads -> (B, H, S, depth): one cheap XLA transpose pass over the
    # compute_dtype projections so the attention kernel reads contiguous
    # per-head (tile, depth) blocks (depth stays the full minor dim).
    def split_heads(x):
        return jnp.transpose(x.reshape(B, S, num_heads, depth), (0, 2, 1, 3))

    q_h, k_h, v_h = split_heads(q_p), split_heads(k_p), split_heads(v_p)

    # ------------ Kernel 2: flash attention + output projection ------------
    tq = _pick_tile(S, q_block)
    # v7x has 2 TensorCores per chip: keep >= 2 units of parallel grid work.
    if B * (S // tq) < 2 and S >= 16:
        tq = _pick_tile(S, max(8, S // 2))
    tk = _pick_tile(S, kv_block)
    nq, nkv = S // tq, S // tk

    q_spec = pl.BlockSpec((1, 1, tq, depth), lambda b, i, h, j: (b, h, i, 0))
    kv_spec = pl.BlockSpec((1, 1, tk, depth), lambda b, i, h, j: (b, h, j, 0))
    wo_spec = pl.BlockSpec((1, depth, D), lambda b, i, h, j: (h, 0, 0))
    bo_spec = pl.BlockSpec((1, D), lambda b, i, h, j: (0, 0))
    out_spec = pl.BlockSpec((1, tq, D), lambda b, i, h, j: (b, i, 0))

    return pl.pallas_call(
        functools.partial(flash_attn_kernel, compute_dtype=compute_dtype),
        out_shape=jax.ShapeDtypeStruct((B, S, D), q.dtype),
        grid_spec=pltpu.PrefetchScalarGridSpec(
            num_scalar_prefetch=0,
            grid=(B, nq, num_heads, nkv),     # head & kv axes are reductions
            in_specs=[q_spec, kv_spec, kv_spec, wo_spec, bo_spec],
            out_specs=out_spec,
            scratch_shapes=[pltpu.VMEM((tq, 1), jnp.float32),       # running max m
                            pltpu.VMEM((tq, 1), jnp.float32),       # running sum l
                            pltpu.VMEM((tq, depth), jnp.float32),   # running context
                            pltpu.VMEM((tq, D), jnp.float32)],      # head-sum accumulator
        ),
        compiler_params=pltpu.CompilerParams(
            dimension_semantics=("parallel", "parallel", "arbitrary", "arbitrary"),
            vmem_limit_bytes=_VMEM_LIMIT),
    )(q_h, k_h, v_h, wo_r, bo_r)


# -----------------------------------------------------------------------------
# Pure-JAX reference (mirrors the PyTorch module) and self-test
# -----------------------------------------------------------------------------
def mha_reference(q, k, v, params, num_heads):
    wq, bq, wk, bk, wv, bv, wo, bo = params
    B, S, D = q.shape
    depth = D // num_heads

    def lin(x, w, b):
        return x @ w.T + b[0]

    def split(x):
        return x.reshape(B, S, num_heads, depth).transpose(0, 2, 1, 3)

    qp, kp, vp = split(lin(q, wq, bq)), split(lin(k, wk, bk)), split(lin(v, wv, bv))
    scores = jnp.einsum("bhqd,bhkd->bhqk", qp, kp) / jnp.sqrt(jnp.float32(depth))
    attn = jax.nn.softmax(scores, axis=-1)
    out = jnp.einsum("bhqk,bhkd->bhqd", attn, vp)
    out = out.transpose(0, 2, 1, 3).reshape(B, S, D)
    return out @ wo.T + bo[0]


if __name__ == "__main__":
    B, S, d_model, num_heads = 2, 8, 32, 4

    key = jax.random.PRNGKey(0)
    keys = jax.random.split(key, 11)

    q = jax.random.normal(keys[0], (B, S, d_model), jnp.float32)
    k = jax.random.normal(keys[1], (B, S, d_model), jnp.float32)
    v = jax.random.normal(keys[2], (B, S, d_model), jnp.float32)

    bound = 1.0 / jnp.sqrt(jnp.float32(d_model))  # PyTorch default Linear init range

    def mk_linear(kw, kb):
        w = jax.random.uniform(kw, (d_model, d_model), jnp.float32, -bound, bound)
        b = jax.random.uniform(kb, (1, d_model), jnp.float32, -bound, bound)
        return w, b

    wq, bq = mk_linear(keys[3], keys[4])
    wk, bk = mk_linear(keys[5], keys[6])
    wv, bv = mk_linear(keys[7], keys[8])
    wo, bo = mk_linear(keys[9], keys[10])
    params = (wq, bq, wk, bk, wv, bv, wo, bo)

    ref = mha_reference(q, k, v, params, num_heads)

    # f32 compute path (same math as the reference; only the approx softmax
    # reciprocal differs).
    out_f32 = multi_head_attention(q, k, v, params, num_heads,
                                   compute_dtype=jnp.float32)
    # bf16 MXU operands / f32 accumulation, f32 inputs & output.
    out_bf16 = multi_head_attention(q, k, v, params, num_heads,
                                    compute_dtype=jnp.bfloat16)
    # bf16 activations end-to-end (exercises the bf16 output writeback path).
    out_bf16_io = multi_head_attention(q.astype(jnp.bfloat16),
                                       k.astype(jnp.bfloat16),
                                       v.astype(jnp.bfloat16),
                                       params, num_heads,
                                       compute_dtype=jnp.bfloat16)
    out_f32, out_bf16, out_bf16_io = jax.block_until_ready(
        (out_f32, out_bf16, out_bf16_io))

    assert out_f32.shape == (B, S, d_model) and out_f32.dtype == jnp.float32
    assert out_bf16.shape == (B, S, d_model) and out_bf16.dtype == jnp.float32
    assert out_bf16_io.shape == (B, S, d_model) and out_bf16_io.dtype == jnp.bfloat16

    assert jnp.allclose(out_f32, ref, atol=2e-2, rtol=2e-2), "f32 kernel mismatch"
    assert jnp.allclose(out_bf16, ref, atol=7e-2, rtol=7e-2), "bf16 kernel mismatch"
    assert jnp.allclose(out_bf16_io.astype(jnp.float32), ref,
                        atol=1e-1, rtol=1e-1), "bf16-io kernel mismatch"

    print("KERNEL_OK")
</pallas_src>

<mosaic_0001>
module attributes {stable_mosaic.version = 11 : i64} {
  func.func @qkv_proj_kernel(%arg0: i32, %arg1: i32, %arg2: memref<1x8x32xf32, #tpu.memory_space<vmem>>, %arg3: memref<1x8x32xf32, #tpu.memory_space<vmem>>, %arg4: memref<1x8x32xf32, #tpu.memory_space<vmem>>, %arg5: memref<32x32xf32, #tpu.memory_space<vmem>>, %arg6: memref<1x32xf32, #tpu.memory_space<vmem>>, %arg7: memref<32x32xf32, #tpu.memory_space<vmem>>, %arg8: memref<1x32xf32, #tpu.memory_space<vmem>>, %arg9: memref<32x32xf32, #tpu.memory_space<vmem>>, %arg10: memref<1x32xf32, #tpu.memory_space<vmem>>, %arg11: memref<1x8x32xf32, #tpu.memory_space<vmem>>, %arg12: memref<1x8x32xf32, #tpu.memory_space<vmem>>, %arg13: memref<1x8x32xf32, #tpu.memory_space<vmem>>) attributes {dimension_semantics = [#tpu.dimension_semantics<parallel>, #tpu.dimension_semantics<parallel>], iteration_bounds = array<i64: 2, 1>, scalar_prefetch = 0 : i64, scratch_operands = 0 : i64, tpu.core_type = #tpu.core_type<tc>, window_params = [{transform_indices = @transform_0, window_bounds = array<i64: 1, 8, 32>}, {transform_indices = @transform_1, window_bounds = array<i64: 1, 8, 32>}, {transform_indices = @transform_2, window_bounds = array<i64: 1, 8, 32>}, {pipeline_mode = #tpu.pipeline_mode<synchronous>, transform_indices = @transform_3, window_bounds = array<i64: 32, 32>}, {pipeline_mode = #tpu.pipeline_mode<synchronous>, transform_indices = @transform_4, window_bounds = array<i64: 1, 32>}, {pipeline_mode = #tpu.pipeline_mode<synchronous>, transform_indices = @transform_5, window_bounds = array<i64: 32, 32>}, {pipeline_mode = #tpu.pipeline_mode<synchronous>, transform_indices = @transform_6, window_bounds = array<i64: 1, 32>}, {pipeline_mode = #tpu.pipeline_mode<synchronous>, transform_indices = @transform_7, window_bounds = array<i64: 32, 32>}, {pipeline_mode = #tpu.pipeline_mode<synchronous>, transform_indices = @transform_8, window_bounds = array<i64: 1, 32>}, {transform_indices = @transform_9, window_bounds = array<i64: 1, 8, 32>}, {transform_indices = @transform_10, window_bounds = array<i64: 1, 8, 32>}, {transform_indices = @transform_11, window_bounds = array<i64: 1, 8, 32>}]} {
    %c0 = arith.constant 0 : index
    %c0_0 = arith.constant 0 : index
    %c0_1 = arith.constant 0 : index
    %0 = vector.load %arg2[%c0, %c0_0, %c0_1] : memref<1x8x32xf32, #tpu.memory_space<vmem>>, vector<1x8x32xf32>
    %1 = vector.shape_cast %0 : vector<1x8x32xf32> to vector<8x32xf32>
    %c0_2 = arith.constant 0 : index
    %c0_3 = arith.constant 0 : index
    %2 = vector.load %arg5[%c0_2, %c0_3] : memref<32x32xf32, #tpu.memory_space<vmem>>, vector<32x32xf32>
    %cst = arith.constant dense<0.000000e+00> : vector<8x32xf32>
    %3 = tpu.matmul %1, %2, %cst {dimension_numbers = #tpu.dot_dimension_numbers<[1], [0], [0], [1], [0, 0, 1, 1], [], []>} : vector<8x32xf32>, vector<32x32xf32>, vector<8x32xf32> -> vector<8x32xf32>
    %c0_4 = arith.constant 0 : index
    %c0_5 = arith.constant 0 : index
    %4 = vector.load %arg6[%c0_4, %c0_5] : memref<1x32xf32, #tpu.memory_space<vmem>>, vector<1x32xf32>
    %5 = vector.broadcast %4 : vector<1x32xf32> to vector<8x32xf32>
    %6 = arith.addf %3, %5 : vector<8x32xf32>
    %c0_6 = arith.constant 0 : index
    %c0_7 = arith.constant 0 : index
    %c0_8 = arith.constant 0 : index
    %7 = vector.load %arg11[%c0_6, %c0_7, %c0_8] : memref<1x8x32xf32, #tpu.memory_space<vmem>>, vector<1x8x32xf32>
    %8 = vector.shape_cast %7 : vector<1x8x32xf32> to vector<8x32xf32>
    %9 = vector.shape_cast %6 : vector<8x32xf32> to vector<1x8x32xf32>
    tpu.vector_store %arg11[%c0_6, %c0_7, %c0_8], %9 {strides = array<i32>} : memref<1x8x32xf32, #tpu.memory_space<vmem>>, vector<1x8x32xf32>,
    %c0_9 = arith.constant 0 : index
    %c0_10 = arith.constant 0 : index
    %c0_11 = arith.constant 0 : index
    %10 = vector.load %arg3[%c0_9, %c0_10, %c0_11] : memref<1x8x32xf32, #tpu.memory_space<vmem>>, vector<1x8x32xf32>
    %11 = vector.shape_cast %10 : vector<1x8x32xf32> to vector<8x32xf32>
    %c0_12 = arith.constant 0 : index
    %c0_13 = arith.constant 0 : index
    %12 = vector.load %arg7[%c0_12, %c0_13] : memref<32x32xf32, #tpu.memory_space<vmem>>, vector<32x32xf32>
    %cst_14 = arith.constant dense<0.000000e+00> : vector<8x32xf32>
    %13 = tpu.matmul %11, %12, %cst_14 {dimension_numbers = #tpu.dot_dimension_numbers<[1], [0], [0], [1], [0, 0, 1, 1], [], []>} : vector<8x32xf32>, vector<32x32xf32>, vector<8x32xf32> -> vector<8x32xf32>
    %c0_15 = arith.constant 0 : index
    %c0_16 = arith.constant 0 : index
    %14 = vector.load %arg8[%c0_15, %c0_16] : memref<1x32xf32, #tpu.memory_space<vmem>>, vector<1x32xf32>
    %15 = vector.broadcast %14 : vector<1x32xf32> to vector<8x32xf32>
    %16 = arith.addf %13, %15 : vector<8x32xf32>
    %c0_17 = arith.constant 0 : index
    %c0_18 = arith.constant 0 : index
    %c0_19 = arith.constant 0 : index
    %17 = vector.load %arg12[%c0_17, %c0_18, %c0_19] : memref<1x8x32xf32, #tpu.memory_space<vmem>>, vector<1x8x32xf32>
    %18 = vector.shape_cast %17 : vector<1x8x32xf32> to vector<8x32xf32>
    %19 = vector.shape_cast %16 : vector<8x32xf32> to vector<1x8x32xf32>
    tpu.vector_store %arg12[%c0_17, %c0_18, %c0_19], %19 {strides = array<i32>} : memref<1x8x32xf32, #tpu.memory_space<vmem>>, vector<1x8x32xf32>,
    %c0_20 = arith.constant 0 : index
    %c0_21 = arith.constant 0 : index
    %c0_22 = arith.constant 0 : index
    %20 = vector.load %arg4[%c0_20, %c0_21, %c0_22] : memref<1x8x32xf32, #tpu.memory_space<vmem>>, vector<1x8x32xf32>
    %21 = vector.shape_cast %20 : vector<1x8x32xf32> to vector<8x32xf32>
    %c0_23 = arith.constant 0 : index
    %c0_24 = arith.constant 0 : index
    %22 = vector.load %arg9[%c0_23, %c0_24] : memref<32x32xf32, #tpu.memory_space<vmem>>, vector<32x32xf32>
    %cst_25 = arith.constant dense<0.000000e+00> : vector<8x32xf32>
    %23 = tpu.matmul %21, %22, %cst_25 {dimension_numbers = #tpu.dot_dimension_numbers<[1], [0], [0], [1], [0, 0, 1, 1], [], []>} : vector<8x32xf32>, vector<32x32xf32>, vector<8x32xf32> -> vector<8x32xf32>
    %c0_26 = arith.constant 0 : index
    %c0_27 = arith.constant 0 : index
    %24 = vector.load %arg10[%c0_26, %c0_27] : memref<1x32xf32, #tpu.memory_space<vmem>>, vector<1x32xf32>
    %25 = vector.broadcast %24 : vector<1x32xf32> to vector<8x32xf32>
    %26 = arith.addf %23, %25 : vector<8x32xf32>
    %c0_28 = arith.constant 0 : index
    %c0_29 = arith.constant 0 : index
    %c0_30 = arith.constant 0 : index
    %27 = vector.load %arg13[%c0_28, %c0_29, %c0_30] : memref<1x8x32xf32, #tpu.memory_space<vmem>>, vector<1x8x32xf32>
    %28 = vector.shape_cast %27 : vector<1x8x32xf32> to vector<8x32xf32>
    %29 = vector.shape_cast %26 : vector<8x32xf32> to vector<1x8x32xf32>
    tpu.vector_store %arg13[%c0_28, %c0_29, %c0_30], %29 {strides = array<i32>} : memref<1x8x32xf32, #tpu.memory_space<vmem>>, vector<1x8x32xf32>,
    return
  }
  func.func @transform_0(%arg0: i32, %arg1: i32) -> (i32, i32, i32) {
    %c0_i32 = arith.constant 0 : i32
    %c0_i32_0 = arith.constant 0 : i32
    return %arg0, %arg1, %c0_i32 : i32, i32, i32
  }
  func.func @transform_1(%arg0: i32, %arg1: i32) -> (i32, i32, i32) {
    %c0_i32 = arith.constant 0 : i32
    %c0_i32_0 = arith.constant 0 : i32
    return %arg0, %arg1, %c0_i32 : i32, i32, i32
  }
  func.func @transform_2(%arg0: i32, %arg1: i32) -> (i32, i32, i32) {
    %c0_i32 = arith.constant 0 : i32
    %c0_i32_0 = arith.constant 0 : i32
    return %arg0, %arg1, %c0_i32 : i32, i32, i32
  }
  func.func @transform_3(%arg0: i32, %arg1: i32) -> (i32, i32) {
    %c0_i32 = arith.constant 0 : i32
    %c0_i32_0 = arith.constant 0 : i32
    %c0_i32_1 = arith.constant 0 : i32
    return %c0_i32, %c0_i32_0 : i32, i32
  }
  func.func @transform_4(%arg0: i32, %arg1: i32) -> (i32, i32) {
    %c0_i32 = arith.constant 0 : i32
    %c0_i32_0 = arith.constant 0 : i32
    %c0_i32_1 = arith.constant 0 : i32
    return %c0_i32, %c0_i32_0 : i32, i32
  }
  func.func @transform_5(%arg0: i32, %arg1: i32) -> (i32, i32) {
    %c0_i32 = arith.constant 0 : i32
    %c0_i32_0 = arith.constant 0 : i32
    %c0_i32_1 = arith.constant 0 : i32
    return %c0_i32, %c0_i32_0 : i32, i32
  }
  func.func @transform_6(%arg0: i32, %arg1: i32) -> (i32, i32) {
    %c0_i32 = arith.constant 0 : i32
    %c0_i32_0 = arith.constant 0 : i32
    %c0_i32_1 = arith.constant 0 : i32
    return %c0_i32, %c0_i32_0 : i32, i32
  }
  func.func @transform_7(%arg0: i32, %arg1: i32) -> (i32, i32) {
    %c0_i32 = arith.constant 0 : i32
    %c0_i32_0 = arith.constant 0 : i32
    %c0_i32_1 = arith.constant 0 : i32
    return %c0_i32, %c0_i32_0 : i32, i32
  }
  func.func @transform_8(%arg0: i32, %arg1: i32) -> (i32, i32) {
    %c0_i32 = arith.constant 0 : i32
    %c0_i32_0 = arith.constant 0 : i32
    %c0_i32_1 = arith.constant 0 : i32
    return %c0_i32, %c0_i32_0 : i32, i32
  }
  func.func @transform_9(%arg0: i32, %arg1: i32) -> (i32, i32, i32) {
    %c0_i32 = arith.constant 0 : i32
    %c0_i32_0 = arith.constant 0 : i32
    return %arg0, %arg1, %c0_i32 : i32, i32, i32
  }
  func.func @transform_10(%arg0: i32, %arg1: i32) -> (i32, i32, i32) {
    %c0_i32 = arith.constant 0 : i32
    %c0_i32_0 = arith.constant 0 : i32
    return %arg0, %arg1, %c0_i32 : i32, i32, i32
  }
  func.func @transform_11(%arg0: i32, %arg1: i32) -> (i32, i32, i32) {
    %c0_i32 = arith.constant 0 : i32
    %c0_i32_0 = arith.constant 0 : i32
    return %arg0, %arg1, %c0_i32 : i32, i32, i32
  }
}

</mosaic_0001>

<bundles_post_ra>
// kernel: tpu_custom_call.1
= control target key start
LH: loop header
LB: loop body
LE: loop exit
PB: predicated region body
PF: predicated region fallthrough
CT: control target
= control target key end

     0   :  { %s1814_s0 = inlined_call_operand.hbm [shape: f32[2,8,32], index: 0, kind: input, shape index: {}]   ;;  %s1815_s1 = inlined_call_operand.hbm [shape: f32[2,8,32], index: 1, kind: input, shape index: {}]   ;;  %s1816_s2 = inlined_call_operand.hbm [shape: f32[2,8,32], index: 2, kind: input, shape index: {}]   ;;  %s1817_s3 = inlined_call_operand.hbm [shape: f32[32,32], index: 3, kind: input, shape index: {}]   ;;  %s1818_s4 = inlined_call_operand.vmem [shape: f32[1,32], index: 4, kind: input, shape index: {}]   ;;  %s1819_s5 = inlined_call_operand.hbm [shape: f32[32,32], index: 5, kind: input, shape index: {}]   ;;  %s1820_s6 = inlined_call_operand.vmem [shape: f32[1,32], index: 6, kind: input, shape index: {}]   ;;  %s1821_s7 = inlined_call_operand.hbm [shape: f32[32,32], index: 7, kind: input, shape index: {}]   ;;  %s1822_s8 = inlined_call_operand.vmem [shape: f32[1,32], index: 8, kind: input, shape index: {}]   ;;  %s1823_s9 = inlined_call_operand.hbm [shape: f32[2,8,32], index: 9, kind: output, shape index: {0}]   ;;  %s1824_s10 = inlined_call_operand.hbm [shape: f32[2,8,32], index: 10, kind: output, shape index: {1}]   ;;  %s1825_s11 = inlined_call_operand.hbm [shape: f32[2,8,32], index: 11, kind: output, shape index: {2}]  }
   0x1   :  { %1841 = sst [smem:[#allocation30_spill]] %s1815_s1 }
   0x2   :  { %1842 = sst [smem:[#allocation31_spill]] %s1817_s3 }
   0x3   :  { %1843 = sst [smem:[#allocation32_spill]] %s1818_s4 }
   0x4   :  { %1844 = sst [smem:[#allocation33_spill]] %s1819_s5 }
   0x5   :  { %1845 = sst [smem:[#allocation34_spill]] %s1820_s6 }
   0x6   :  { %1846 = sst [smem:[#allocation35_spill]] %s1821_s7 }
   0x7   :  { %1847 = sst [smem:[#allocation36_spill]] %s1822_s8 }
   0x8   :  { %1848 = sst [smem:[#allocation37_spill]] %s1825_s11 }
   0x9   :  { %17 = vsyncpa [#allocation3], 0 }
   0xa   :  { %19 = vsyncpa [#allocation3 + $0x1], 0 }
   0xb   :  { %20 = vsyncpa [#allocation6], 0 }
   0xc   :  { %22 = vsyncpa [#allocation6 + $0x1], 0 }
   0xd   :  { %23 = vsyncpa [#allocation9], 0 }
   0xe   :  { %24 = vsyncpa [#allocation12], 0 }
   0xf   :  { %25 = vsyncpa [#allocation4], 0 }
  0x10   :  { %27 = vsyncpa [#allocation4 + $0x1], 0 }
  0x11   :  { %28 = vsyncpa [#allocation15], 0 }
  0x12   :  { %30 = vsyncpa [#allocation15 + $0x1], 0  ;;  %s1503_s17 = smov 0   ;;  %s1505_s18 = smov 0  }
  0x13   :  { %s1507_s19 = smov 0   ;;  %s1509_s20 = smov 0  }
  0x14   :  { %s1511_s21 = smov 0   ;;  %s1513_s22 = smov 0  }
  0x15 LB: > { %1849 = sst [smem:[#allocation23_spill]] %s1416_s17  ;;  %s1534_s23 = sadd.s32 4294967295, %s1436_s22   ;;  %s1436_s22 = sphi %s1513_s22, %s36_s22   ;;  %s1432_s21 = sphi %s1511_s21, %s1881_s21   ;;  %s1428_s20 = sphi %s1509_s20, %s1880_s20   ;;  %s1424_s19 = sphi %s1507_s19, %s1884_s19   ;;  %s1420_s18 = sphi %s1505_s18, %s1883_s18   ;;  %s1416_s17 = sphi %s1503_s17, %s1882_s17  }
  0x16   : > { %1850 = sst [smem:[#allocation24_spill]] %s1432_s21  ;;  %p952_p0 = scmp.ge.s32.totalorder %s1436_s22, 1 }
  0x17   : > { %1851 = sst [smem:[#allocation25_spill]] %s1436_s22  ;;  %p71_p1 = scmp.eq.s32.totalorder %s1534_s23, 0 }
  0x18   : > { %p347_p2 = scmp.lt.s32.totalorder %s1436_s22, 3  ;;  %s1852_s3 = sld [smem:[#allocation31_spill]] }
  0x19   : > { %s1438_s28 = smov [#allocation8]   ;;  %p956_p6 = scmp.ge.s32.totalorder %s1436_s22, 2 }
  0x1a   : > { %p1542_p3 = pnand %p952_p0, %p347_p2  ;;  %s360_s29 = sshll.u32 %s1438_s28, 4  ;;  %s361_s29 = int_to_ptr.vmem [resolvable:$true] %s360_s29 }
  0x1b   : > { %s1826_s12 = smov 128   ;;  %s1828_s13 = smov 8  }
  0x1c   : > { %p1008_p4 = pneg %p1542_p3  ;;  %s1831_s14 = sadd.s32 4294967294, %s1436_s22  }
  0x1d   : > { %s48_s15 = sadd.s32 1, %s1432_s21  ;;  %s57_s16 = sadd.s32 1, %s1424_s19 }
  0x1e   : > { %s358_s26 = sshll.u32 %s1852_s3, 4  ;;  %p1550_p5 = pnand %p1008_p4, %p71_p1  ;;  %s359_s26 = int_to_ptr.hbm [resolvable:$true] %s358_s26 }
  0x1f   : > { %p50_p7 = scmp.ge.s32.totalorder %s48_s15, 2  ;;  %p64_p8 = scmp.ne.s32.totalorder %s1424_s19, %s1420_s18 }
  0x20   : > { %1011 = dma.hbm_to_vmem [thread:$0]  (!%p1550_p5), %s359_s26, 512, %s361_s29, [#allocation9], %s1826_s12, %s1826_s12, %s1828_s13  }
  0x21   : > { %p65_p9 = scmp.eq.s32.totalorder %s1436_s22, 0  ;;  %p70_p10 = scmp.ne.s32.totalorder %s1420_s18, %s1416_s17 }
  0x22   : > { %s1886_s15 = smov (%p50_p7, %s48_s15), 0  ;;  %p278_p13 = scmp.eq.s32.totalorder %s1534_s23, 1 }
  0x23   : > { %1855 = sst [smem:[#allocation26_spill]] %s1886_s15  ;;  %p1570_p11 = por %p65_p9, %p64_p8 }
  0x24   : > { %p1576_p12 = por %p71_p1, %p70_p10  ;;  %s52_s26 = ssub.s32 %s1432_s21, %s1886_s15 }
  0x25   : > { %p55_p0 = scmp.eq.s32.totalorder %s52_s26, 0  ;;  %p284_p2 = scmp.eq.s32.totalorder %s1831_s14, 1 }
  0x26   : > { %p1585_p4 = por %p278_p13, %p64_p8  ;;  %p1041_p7 = scmp.lt.s32.totalorder %s1436_s22, 2 }
  0x27   : > { %s1591_s29 = scalar_select %p55_p0, %s1424_s19, %s57_s16  }
  0x28   : > { %s1858_s28 = scalar_select %p1585_p4, 1, 0 }
  0x29   : > { %1860 = sst [smem:[#allocation28_spill]] %s1591_s29  ;;  %p1593_p9 = por %p284_p2, %p70_p10 }
  0x2a   : > { %1859 = sst [smem:[#allocation27_spill]] %s1858_s28  ;;  %s1834_s13 = sand.u32 1, %s1424_s19  }
  0x2b   : > { %s1861_s12 = scalar_select %p1593_p9, 1, 0 }
  0x2c   : > { %s1600_s3 = sshll.u32 %s1834_s13, 3  ;;  %s1603_s15 = sshll.u32 %s1432_s21, 3 }
  0x2d   : > { %1862 = sst [smem:[#allocation29_spill]] %s1861_s12  ;;  %p1607_p8 = pnand %p1041_p7, %p1570_p11 }
  0x2e   : > { %s431_s16 = sand.u32 1, %s1436_s22   ;;  %s1864_s1 = sld [smem:[#allocation30_spill]] }
  0x2f   : > { %s435_s8 = scalar_lea.vmem [#allocation5], %s1600_s3  ;;  %s1617_s24 = scalar_lea.sflag [#allocation6], %s431_s16 }
  0x30   : > { %s444_s13 = sshll.u32 %s435_s8, 4  ;;  %s1865_s5 = sld [smem:[#allocation33_spill]]  ;;  %s445_s13 = int_to_ptr.vmem [resolvable:$true] %s444_s13 }
  0x31   : > { %s1441_s14 = smov [#allocation10]   ;;  %s1866_s7 = sld [smem:[#allocation35_spill]] }
  0x32   : > { %s1867_s16 = smov 8   ;;  %s1868_s11 = smov 128  }
  0x33   : > { %s415_s8 = scalar_lea.vmem [#allocation2], %s1600_s3  ;;  %s455_s4 = scalar_lea.vmem [#allocation7], %s1600_s3 }
  0x34   : > { %s440_s12 = scalar_lea.hbm %s1864_s1, %s1603_s15  ;;  %s424_s29 = sshll.u32 %s415_s8, 4  ;;  %s425_s29 = int_to_ptr.vmem [resolvable:$true] %s424_s29 }
  0x35   : > { %s442_s17 = sshll.u32 %s440_s12, 4  ;;  %s377_s12 = sshll.u32 %s1441_s14, 4  ;;  %s443_s17 = int_to_ptr.hbm [resolvable:$true] %s442_s17  ;;  %s378_s12 = int_to_ptr.vmem [resolvable:$true] %s377_s12 }
  0x36   : > { %1024 = dma.hbm_to_vmem [thread:$0]  (!%p1607_p8), %s443_s17, 128, %s445_s13, %s1617_s24  }
  0x37   : > { %s375_s22 = sshll.u32 %s1865_s5, 4  ;;  %s392_s1 = sshll.u32 %s1866_s7, 4  ;;  %s376_s22 = int_to_ptr.hbm [resolvable:$true] %s375_s22  ;;  %s393_s1 = int_to_ptr.hbm [resolvable:$true] %s392_s1 }
  0x38   : > { %1014 = dma.hbm_to_vmem [thread:$0]  (!%p1550_p5), %s376_s22, 512, %s378_s12, [#allocation9], %s1868_s11, %s1868_s11, %s1867_s16  }
  0x39   : > { %s1442_s17 = smov [#allocation11]   ;;  %s420_s14 = scalar_lea.hbm %s1814_s0, %s1603_s15 }
  0x3a   : > { %s394_s21 = sshll.u32 %s1442_s17, 4  ;;  %s422_s5 = sshll.u32 %s420_s14, 4  ;;  %s395_s21 = int_to_ptr.vmem [resolvable:$true] %s394_s21  ;;  %s423_s5 = int_to_ptr.hbm [resolvable:$true] %s422_s5 }
  0x3b   : > { %1017 = dma.hbm_to_vmem [thread:$0]  (!%p1550_p5), %s393_s1, 512, %s395_s21, [#allocation12], %s1868_s11, %s1868_s11, %s1867_s16  }
  0x3c   : > { %s1869_s22 = sand.u32 1, %s1424_s19   ;;  %s460_s7 = scalar_lea.hbm %s1816_s2, %s1603_s15 }
  0x3d   : > { %s412_s12 = scalar_lea.sflag [#allocation3], %s1869_s22  ;;  %s464_s6 = sshll.u32 %s455_s4, 4  ;;  %s465_s6 = int_to_ptr.vmem [resolvable:$true] %s464_s6 }
  0x3e   : > { %1021 = dma.hbm_to_vmem [thread:$0]  (!%p1607_p8), %s423_s5, 128, %s425_s29, %s412_s12  }
  0x3f   : > { %s462_s1 = sshll.u32 %s460_s7, 4  ;;  %473 = sbr.rel (%p1542_p3) target bundleno = 246 (0xf6), region = 56  ;;  %s463_s1 = int_to_ptr.hbm [resolvable:$true] %s462_s1 }
  0x40   : > { %1027 = dma.hbm_to_vmem [thread:$0]  (!%p1607_p8), %s463_s1, 128, %s465_s6, %s1617_s24  }
  0x41   : > { %s1658_s11 = sand.u32 (!%p1542_p3), 1, %s1420_s18  }
  0x42   : > { %s1661_s5 = sshll.u32 (!%p1542_p3), %s1658_s11, 3  ;;  %s476_s15 = scalar_lea.sflag (!%p1542_p3), [#allocation3], %s1658_s11 }
  0x43   : > { %s479_s3 = scalar_lea.vmem (!%p1542_p3), [#allocation2], %s1661_s5 }
  0x44   : > { %1391 = dma.done.wait (%p1576_p12), %s476_s15, 128  }
  0x45   : > { %1393 = vsyncadd (%p1576_p12), %s476_s15, 4294967168  ;;  %s485_s4 = sand.u32 1, %s1534_s23   ;;  %s489_s7 = scalar_lea.vmem [#allocation5], %s1661_s5 }
  0x46   : > { %s486_s6 = scalar_lea.sflag [#allocation6], %s485_s4 }
  0x47   : > { %1395 = dma.done.wait (%p1576_p12), %s486_s6, 256  }
  0x48   : > { %1397 = vsyncadd (%p1576_p12), %s486_s6, 4294967040  ;;  %s499_s27 = scalar_lea.vmem [#allocation7], %s1661_s5 }
  0x49   : > { %1399 = dma.done.wait (%p71_p1), [#allocation9], 1024  }
  0x4a   : > { %1401 = vsyncadd (%p71_p1), [#allocation9], 4294966272 }
  0x4b   : > { %1403 = dma.done.wait (%p71_p1), [#allocation12], 512  }
  0x4c   : > { %1405 = vsyncadd (%p71_p1), [#allocation12], 4294966784  ;;  %v645_v0 = vld [vmem:[#allocation11 + $0x18] sm:$0xff]  ;;  %v644_v1 = vld [vmem:[#allocation11 + $0x10] sm:$0xff]  ;;  %vm583_vm0 = vcmask 261120   ;;  %s979_s25 = sshll.u32 %s1428_s20, 3 }
  0x4d   : > { %665 = vmatpush.msra.mxu2 %v645_v0  ;;  %v612_v2 = vld [vmem:[#allocation10 + $0x18] sm:$0xff]  ;;  %v643_v4 = vld [vmem:[#allocation11 + $0x8] sm:$0xff]  ;;  %v611_v5 = vld [vmem:[#allocation10 + $0x10] sm:$0xff]  ;;  %s711_s16 = scalar_lea.hbm %s1824_s10, %s979_s25  ;;  %s566_s21 = scalar_lea.vmem [#allocation14], %s1661_s5 }
  0x4e   : > { %v578_v3 = vld [vmem:[#allocation8 + $0x18] sm:$0xff]  ;;  %632 = vmatpush.msra.mxu1 %v612_v2  ;;  %v577_v6 = vld [vmem:[#allocation8 + $0x10] sm:$0xff]  ;;  %v610_v7 = vld [vmem:[#allocation10 + $0x8] sm:$0xff]  ;;  %s1698_s13 = sshll.u32 %s566_s21, 4  ;;  %s696_s8 = scalar_lea.hbm %s1823_s9, %s979_s25  ;;  %s714_s13 = int_to_ptr.vmem [resolvable:$true] %s1698_s13 }
  0x4f   : > { %599 = vmatpush.msra.mxu0 %v578_v3  ;;  %666 = vmatpush.msra.mxu2 %v644_v1  ;;  %v576_v8 = vld [vmem:[#allocation8 + $0x8] sm:$0xff]  ;;  %v642_v9 = vld [vmem:[#allocation11] sm:$0xff]  ;;  %v641_v10 = vld [vmem:[%s499_s27] sm:$0xff]  ;;  %s1870_s12 = sld [smem:[#allocation34_spill]]  ;;  %s1710_s20 = sshll.u32 %s711_s16, 4  ;;  %s716_s20 = int_to_ptr.hbm [resolvable:$true] %s1710_s20 }
  0x50   : > { %633 = vmatpush.msra.mxu1 %v611_v5  ;;  %v609_v11 = vld [vmem:[#allocation10] sm:$0xff]  ;;  %v574_v14 = vld [vmem:[%s479_s3] sm:$0xff]  ;;  %s1871_s1 = sld [smem:[#allocation32_spill]]  ;;  %s559_s15 = scalar_lea.vmem [#allocation13], %s1661_s5 }
  0x51   : > { %600 = vmatpush.msra.mxu0 %v577_v6  ;;  %667 = vmatpush.msra.mxu2 %v643_v4  ;;  %v575_v12 = vld [vmem:[#allocation8] sm:$0xff]  ;;  %s1715_s3 = sshll.u32 %s559_s15, 4  ;;  %s1717_s6 = sshll.u32 %s696_s8, 4  ;;  %s699_s3 = int_to_ptr.vmem [resolvable:$true] %s1715_s3  ;;  %s701_s6 = int_to_ptr.hbm [resolvable:$true] %s1717_s6 }
  0x52   : > { %634 = vmatpush.msra.mxu1 %v610_v7  ;;  %v608_v13 = vld [vmem:[%s489_s7] sm:$0xff]  ;;  %s1872_s26 = sld [smem:[#allocation37_spill]]  ;;  %s573_s8 = scalar_lea.vmem [#allocation16], %s1661_s5 }
  0x53   : > { %601 = vmatpush.msra.mxu0 %v576_v8  ;;  %668 = vmatpush.msra.mxu2 %v642_v9  ;;  %s1874_s29 = sld [smem:[#allocation36_spill]]  ;;  %s1732_s22 = sshll.u32 %s573_s8, 4  ;;  %s729_s22 = int_to_ptr.vmem [resolvable:$true] %s1732_s22 }
  0x54   : > { %975 = vmatmul.msk.f32.vlgmr.msra.gmra.mxu2 %vm583_vm0, %v641_v10  ;;  %635 = vmatpush.msra.mxu1 %v609_v11  ;;  %s1296_s30 = sshra.s32 %s716_s20, 4  ;;  %s1297_s30 = int_to_ptr.hbm [resolvable:$true] %s1296_s30 }
  0x55   : > { %602 = vmatpush.msra.mxu0 %v575_v12  ;;  %974 = vmatmul.msk.f32.vlgmr.msra.gmra.mxu1 %vm583_vm0, %v608_v13  ;;  %v1099_v15 = vld [vmem:[%s1870_s12] ss:$0 sm:$0xff]  ;;  %s1298_s17 = scalar_lea.hbm %s1297_s30, 8  ;;  %p1303_p10 = scmp.lt.s32.totalorder %s1297_s30, %s1824_s10 }
  0x56   : > { %973 = vmatmul.msk.f32.vlgmr.msra.gmra.mxu0 %vm583_vm0, %v574_v14  ;;  %v1100_v16 = vld [vmem:[%s1871_s1] ss:$0 sm:$0xff]  ;;  %p1299_p1 = scmp.ne.s32.totalorder %s1297_s30, %s1298_s17 }
  0x58   : > { %s726_s24 = scalar_lea.hbm %s1872_s26, %s979_s25  ;;  %s1738_s25 = scalar_lea.sflag [#allocation15], %s485_s4 }
  0x59   : > { %v1101_v21 = vld [vmem:[%s1874_s29] ss:$0 sm:$0xff]  ;;  %s1734_s12 = sshll.u32 %s726_s24, 4  ;;  %p1300_p3 = pnand %p1299_p1, %p1585_p4  ;;  %s731_s12 = int_to_ptr.hbm [resolvable:$true] %s1734_s12 }
  0x5b   : > { %p1301_p5 = pneg %p1300_p3 }
  0xd2   : > { %v637_v17 = vpop.f32.mrf.mxu1 }
  0xd3   : > { %v638_v18 = vadd.f32 %v1099_v15, %v637_v17  ;;  %v604_v19 = vpop.f32.mrf.mxu0 }
  0xd4   : > { %v605_v20 = vadd.f32 %v1100_v16, %v604_v19 }
  0xd5   : > { %640 = vst.msk [vmem:[%s566_s21] sm:$0xff] %vm583_vm0, %v638_v18  ;;  %s1302_s21 = scalar_lea.hbm %s1824_s10, 16 }
  0xd6   : > { %p1304_p11 = scmp.lt.s32.totalorder %s1302_s21, %s1298_s17 }
  0xd8   : > { %p1305_p12 = por %p1304_p11, %p1303_p10 }
  0xda   : > { %p1306_p13 = pnand %p1305_p12, %p1301_p5 }
  0xdc   : > { %1309 = shalt.err (!%p1306_p13)
}
  0xdd   : > { %1003 = dma.vmem_to_hbm [thread:$0]  (%p1585_p4), %s714_s13, 128, %s716_s20, %s1738_s25   ;;  %607 = vst.msk [vmem:[%s559_s15] sm:$0xff] %vm583_vm0, %v605_v20  ;;  %v670_v22 = vpop.f32.mrf.mxu2 }
  0xde   : > { %s675_s23 = scalar_lea.sflag [#allocation4], %s1658_s11  ;;  %s1324_s4 = sshra.s32 %s701_s6, 4  ;;  %s1325_s4 = int_to_ptr.hbm [resolvable:$true] %s1324_s4 }
  0xdf   : > { %s1326_s24 = scalar_lea.hbm %s1325_s4, 8  ;;  %s1330_s30 = scalar_lea.hbm %s1823_s9, 16 }
  0xe0   : > { %p1327_p0 = scmp.ne.s32.totalorder %s1325_s4, %s1326_s24  ;;  %p1331_p8 = scmp.lt.s32.totalorder %s1325_s4, %s1823_s9 }
  0xe1   : > { %p1332_p1 = scmp.lt.s32.totalorder %s1330_s30, %s1326_s24 }
  0xe2   : > { %p1328_p2 = pnand %p1327_p0, %p1585_p4 }
  0xe3   : > { %p1333_p3 = por %p1332_p1, %p1331_p8 }
  0xe4   : > { %p1329_p7 = pneg %p1328_p2 }
  0xe6   : > { %p1334_p5 = pnand %p1333_p3, %p1329_p7 }
  0xe8   : > { %1337 = shalt.err (!%p1334_p5)
}
  0xe9   : > { %1002 = dma.vmem_to_hbm [thread:$0]  (%p1585_p4), %s699_s3, 128, %s701_s6, %s675_s23   ;;  %v671_v23 = vadd.f32 %v1101_v21, %v670_v22 }
  0xea   : > { %s1352_s11 = sshra.s32 %s731_s12, 4  ;;  %s1358_s7 = scalar_lea.hbm %s1872_s26, 16  ;;  %s1353_s11 = int_to_ptr.hbm [resolvable:$true] %s1352_s11 }
  0xeb   : > { %673 = vst.msk [vmem:[%s573_s8] sm:$0xff] %vm583_vm0, %v671_v23  ;;  %s1354_s13 = scalar_lea.hbm %s1353_s11, 8  ;;  %p1359_p13 = scmp.lt.s32.totalorder %s1353_s11, %s1872_s26 }
  0xec   : > { %p1355_p10 = scmp.ne.s32.totalorder %s1353_s11, %s1354_s13  ;;  %p1360_p0 = scmp.lt.s32.totalorder %s1358_s7, %s1354_s13 }
  0xee   : > { %p1356_p11 = pnand %p1355_p10, %p1585_p4  ;;  %p1361_p2 = por %p1360_p0, %p1359_p13 }
  0xf0   : > { %p1357_p12 = pneg %p1356_p11 }
  0xf2   : > { %p1362_p7 = pnand %p1361_p2, %p1357_p12 }
  0xf4   : > { %1365 = shalt.err (!%p1362_p7)
}
  0xf5   : > { %1004 = dma.vmem_to_hbm [thread:$0]  (%p1585_p4), %s729_s22, 128, %s731_s12, %s1738_s25  }
  0xf6 PF: > { %s1875_s5 = sld [smem:[#allocation23_spill]]  ;;  %p1029_p8 = pnand %p956_p6, %p1593_p9 }
  0xf7   : > { %s1877_s6 = sld [smem:[#allocation25_spill]] }
  0xf8   : > { %p1030_p1 = pneg %p1029_p8 }
  0xfc   : > { %s742_s8 = sand.u32 1, %s1875_s5  }
  0xfd   : > { %s743_s16 = scalar_lea.sflag [#allocation4], %s742_s8 }
  0xfe   : > { %1407 = dma.done.wait (%p1030_p1), %s743_s16, 128  }
  0xff   : > { %1409 = vsyncadd (%p1030_p1), %s743_s16, 4294967168  ;;  %s1878_s23 = sadd.s32 4294967294, %s1877_s6  }
 0x100   : > { %s752_s4 = sand.u32 1, %s1878_s23  }
 0x101   : > { %s753_s24 = scalar_lea.sflag [#allocation15], %s752_s4 }
 0x102   : > { %1411 = dma.done.wait (%p1030_p1), %s753_s24, 256  }
 0x103   : > { %1413 = vsyncadd (%p1030_p1), %s753_s24, 4294967040  ;;  %s36_s22 = sadd.s32 1, %s1877_s6   ;;  %s1879_s28 = sld [smem:[#allocation28_spill]] }
 0x104   : > { %p33_p4 = scmp.ge.s32.totalorder %s36_s22, 4   ;;  %s1880_s20 = sld [smem:[#allocation24_spill]] }
 0x105   : > { %s1881_s21 = sld [smem:[#allocation26_spill]]  ;;  %s1882_s17 = smov %s1420_s18 }
 0x106   : > { %s1883_s18 = smov %s1424_s19  ;;  %35 = sbr.rel (!%p33_p4) target bundleno = 21 (0x15), region = 169 }
 0x109   : > { %s1884_s19 = smov %s1879_s28 }
 0x10b   :  { %769 = vsyncpa [#allocation3], 1 }
 0x10c   :  { %771 = vsyncpa [#allocation3 + $0x1], 1 }
 0x10d   :  { %772 = vsyncpa [#allocation6], 1 }
 0x10e   :  { %774 = vsyncpa [#allocation6 + $0x1], 1 }
 0x10f   :  { %775 = vsyncpa [#allocation9], 1 }
 0x110   :  { %776 = vsyncpa [#allocation12], 1 }
 0x111   :  { %777 = vsyncpa [#allocation4], 1 }
 0x112   :  { %779 = vsyncpa [#allocation4 + $0x1], 1 }
 0x113   :  { %780 = vsyncpa [#allocation15], 1 }
 0x114   :  { %782 = vsyncpa [#allocation15 + $0x1], 1 }

</bundles_post_ra>
